<compile_context>
chip_gen: v7x
topology: tpu7x:2x2x1
jax: 0.10.0
libtpu: 0.0.40
codegen_flags: <defaults>
</compile_context>

<pallas_src>
import functools

import jax
import jax.numpy as jnp
from jax.experimental import pallas as pl
from jax.experimental.pallas import tpu as pltpu

EPS = 1e-5    # nn.BatchNorm2d default eps
LANES = 128   # TPU lane width


def conv_bn_relu_kernel(p_ref, w_ref, gamma_ref, beta_ref, o_ref, *, inv_cnt):
    """Conv-as-matmul (im2col patches x weights) + one-pass batch-stat BN + ReLU.

    p_ref:     [M, KKC]  bf16   im2col patches; rows = (n, oh, ow), cols = (kh, kw, cin)
    w_ref:     [KKC, Cp] bf16   Cp = Cout zero-padded to 128 lanes
    gamma_ref: [1, Cp]   f32
    beta_ref:  [1, Cp]   f32
    o_ref:     [M, Cp]   f32
    """
    # Single MXU contraction, f32 accumulation.
    acc = jnp.dot(p_ref[...], w_ref[...],
                  preferred_element_type=jnp.float32)        # [M, Cp] f32

    # Conv bias intentionally omitted: train-mode (batch-stat) BN subtracts the
    # per-channel mean, which cancels the bias exactly.

    # --- BatchNorm2d (training mode), one statistics pass over the M rows ---
    s = jnp.sum(acc, axis=0, keepdims=True)                  # [1, Cp]
    ssq = jnp.sum(acc * acc, axis=0, keepdims=True)          # [1, Cp]
    mean = s * inv_cnt
    var = ssq * inv_cnt - mean * mean                        # biased variance

    # Fold gamma into inv-std and (beta - mean*scale) into one shift: the tail is a
    # single fused multiply-add + ReLU pass over acc (no `centered` temp).
    scale = jax.lax.rsqrt(var + EPS) * gamma_ref[...]        # [1, Cp]
    shift = beta_ref[...] - mean * scale                     # [1, Cp]
    o_ref[...] = jnp.maximum(acc * scale + shift, 0.0).astype(o_ref.dtype)

    # TODO(synk): nn.BatchNorm2d running_mean / running_var buffer updates are not
    # emitted; only the training-mode forward normalization is computed.


def _padded_2d_bytes(rows, cols, itemsize):
    """VMEM footprint of a 2D array after (sublane, lane) tiling/padding."""
    sub = 8 * (4 // itemsize)                 # 8 for 32-bit, 16 for 16-bit (packed)
    rp = -(-rows // sub) * sub
    cp = -(-cols // LANES) * LANES
    return rp * cp * itemsize


def conv_unit_forward(x_nchw, w_oihw, b, gamma, beta, *, mxu_dtype=jnp.bfloat16):
    """Wrapper: NCHW/OIHW params -> im2col -> lane-dense Pallas kernel -> NCHW out."""
    N, Cin, H, W = x_nchw.shape
    Cout, _, K, _ = w_oihw.shape
    OH, OW = H - K + 1, W - K + 1
    M = N * OH * OW                            # 392 here; exact multiple of 8
    KKC = K * K * Cin
    Cp = ((Cout + LANES - 1) // LANES) * LANES

    # --- im2col in the wrapper (layout plumbing): rows=(n,oh,ow), cols=(kh,kw,cin) ---
    x_nhwc = jnp.transpose(x_nchw, (0, 2, 3, 1))                       # [N, H, W, Cin]
    taps = [x_nhwc[:, kh:kh + OH, kw:kw + OW, :]
            for kh in range(K) for kw in range(K)]
    patches = jnp.concatenate(taps, axis=-1).reshape(M, KKC).astype(mxu_dtype)

    # Weights: OIHW -> rows ordered (kh, kw, cin) to match the patch column order,
    # zero-padded on the lane (Cout) axis.
    w_rows = jnp.transpose(w_oihw, (2, 3, 1, 0)).reshape(KKC, Cout)
    w_mat = jnp.zeros((KKC, Cp), mxu_dtype).at[:, :Cout].set(w_rows.astype(mxu_dtype))

    gamma_p = jnp.zeros((1, Cp), jnp.float32).at[0, :Cout].set(gamma.astype(jnp.float32))
    beta_p = jnp.zeros((1, Cp), jnp.float32).at[0, :Cout].set(beta.astype(jnp.float32))
    # Conv bias `b` is unused on purpose: batch-stat BN cancels it exactly.
    # NOTE: an eval-mode (running-stats) variant must NOT inherit this omission.
    del b

    # VMEM budget: account for tiled-layout padding (lane dim -> 128, sublane packing).
    bpe = 2 if mxu_dtype == jnp.bfloat16 else 4
    est_bytes = (_padded_2d_bytes(M, KKC, bpe)            # patches
                 + _padded_2d_bytes(KKC, Cp, bpe)         # weights
                 + 2 * _padded_2d_bytes(1, Cp, 4)         # gamma, beta
                 + 3 * _padded_2d_bytes(M, Cp, 4))        # f32 acc, acc*acc temp, out
    try:
        vmem_cap = int(pltpu.get_tpu_info().vmem_capacity_bytes)
    except Exception:  # pragma: no cover - conservative fallback
        vmem_cap = 64 << 20
    # ~75% of physical VMEM: ~48 MiB on v7x (64 MiB/TC), ~96 MiB on v5e/v6e (128 MiB).
    vmem_limit = int(min((vmem_cap * 3) // 4, max(16 << 20, 4 * est_bytes)))

    kernel = functools.partial(conv_bn_relu_kernel, inv_cnt=1.0 / float(M))
    vmem_spec = pl.BlockSpec(memory_space=pltpu.MemorySpace.VMEM)

    out = pl.pallas_call(
        kernel,
        out_shape=jax.ShapeDtypeStruct((M, Cp), jnp.float32),
        in_specs=[vmem_spec] * 4,
        out_specs=vmem_spec,
        compiler_params=pltpu.CompilerParams(vmem_limit_bytes=vmem_limit),
    )(patches, w_mat, gamma_p, beta_p)

    # Single-module boundary: slice padded channels and return to NCHW.  When chaining
    # ConvUnits, keep the padded [M, 128] / NHWC layout flowing between layers and do
    # this slice + transpose once at the network boundary instead.
    out_nhwc = out[:, :Cout].reshape(N, OH, OW, Cout)
    return jnp.transpose(out_nhwc, (0, 3, 1, 2))


def _reference_forward(x, w, b, gamma, beta):
    """Pure-JAX f32 reference: Conv2d -> BatchNorm2d(train) -> ReLU."""
    y = jax.lax.conv_general_dilated(
        x, w, window_strides=(1, 1), padding="VALID",
        dimension_numbers=("NCHW", "OIHW", "NCHW"))
    y = y + b[None, :, None, None]
    mean = jnp.mean(y, axis=(0, 2, 3), keepdims=True)
    var = jnp.mean((y - mean) ** 2, axis=(0, 2, 3), keepdims=True)
    y = (y - mean) * jax.lax.rsqrt(var + EPS)
    y = y * gamma[None, :, None, None] + beta[None, :, None, None]
    return jnp.maximum(y, 0.0)


if __name__ == "__main__":
    # Small shapes consistent with ConvUnit(in_deg=4, out_deg=8, kernel=3).
    N, Cin, Cout, H, W, K = 2, 4, 8, 16, 16, 3

    key = jax.random.PRNGKey(0)
    kx, kw, kb = jax.random.split(key, 3)

    x = jax.random.normal(kx, (N, Cin, H, W), dtype=jnp.float32)
    fan_in = Cin * K * K
    bound = 1.0 / (fan_in ** 0.5)
    conv_w = jax.random.uniform(kw, (Cout, Cin, K, K), jnp.float32, -bound, bound)
    conv_b = jax.random.uniform(kb, (Cout,), jnp.float32, -bound, bound)
    bn_gamma = jnp.ones((Cout,), jnp.float32)   # nn.BatchNorm2d default weight
    bn_beta = jnp.zeros((Cout,), jnp.float32)   # nn.BatchNorm2d default bias

    out = conv_unit_forward(x, conv_w, conv_b, bn_gamma, bn_beta)
    jax.block_until_ready(out)

    assert out.shape == (N, Cout, H - K + 1, W - K + 1)

    # Loose tolerance: MXU operands are bf16; BN output values are O(1).
    ref = _reference_forward(x, conv_w, conv_b, bn_gamma, bn_beta)
    max_err = float(jnp.max(jnp.abs(out - ref)))
    assert jnp.allclose(out, ref, atol=1e-1, rtol=1e-1), max_err

    print("KERNEL_OK")
</pallas_src>

<mosaic_0001>
module attributes {stable_mosaic.version = 11 : i64} {
  func.func @conv_bn_relu_kernel(%arg0: memref<392x36xbf16, #tpu.memory_space<vmem>>, %arg1: memref<36x128xbf16, #tpu.memory_space<vmem>>, %arg2: memref<1x128xf32, #tpu.memory_space<vmem>>, %arg3: memref<1x128xf32, #tpu.memory_space<vmem>>, %arg4: memref<392x128xf32, #tpu.memory_space<vmem>>) attributes {dimension_semantics = [], scalar_prefetch = 0 : i64, scratch_operands = 0 : i64, tpu.core_type = #tpu.core_type<tc>} {
    %c0 = arith.constant 0 : index
    %c0_0 = arith.constant 0 : index
    %0 = vector.load %arg0[%c0, %c0_0] : memref<392x36xbf16, #tpu.memory_space<vmem>>, vector<392x36xbf16>
    %c0_1 = arith.constant 0 : index
    %c0_2 = arith.constant 0 : index
    %1 = vector.load %arg1[%c0_1, %c0_2] : memref<36x128xbf16, #tpu.memory_space<vmem>>, vector<36x128xbf16>
    %cst = arith.constant dense<0.000000e+00> : vector<392x128xf32>
    %2 = tpu.matmul %0, %1, %cst {dimension_numbers = #tpu.dot_dimension_numbers<[1], [0], [0], [1], [0, 0, 1, 1], [], []>} : vector<392x36xbf16>, vector<36x128xbf16>, vector<392x128xf32> -> vector<392x128xf32>
    %cst_3 = arith.constant dense<0.000000e+00> : vector<128xf32>
    %3 = vector.multi_reduction <add>, %2, %cst_3 [0] : vector<392x128xf32> to vector<128xf32>
    %4 = vector.shape_cast %3 : vector<128xf32> to vector<1x128xf32>
    %5 = arith.mulf %2, %2 : vector<392x128xf32>
    %cst_4 = arith.constant dense<0.000000e+00> : vector<128xf32>
    %6 = vector.multi_reduction <add>, %5, %cst_4 [0] : vector<392x128xf32> to vector<128xf32>
    %7 = vector.shape_cast %6 : vector<128xf32> to vector<1x128xf32>
    %cst_5 = arith.constant 0.00255102036 : f32
    %8 = vector.broadcast %cst_5 : f32 to vector<1x128xf32>
    %9 = arith.mulf %4, %8 : vector<1x128xf32>
    %cst_6 = arith.constant 0.00255102036 : f32
    %10 = vector.broadcast %cst_6 : f32 to vector<1x128xf32>
    %11 = arith.mulf %7, %10 : vector<1x128xf32>
    %12 = arith.mulf %9, %9 : vector<1x128xf32>
    %13 = arith.subf %11, %12 : vector<1x128xf32>
    %cst_7 = arith.constant 9.99999974E-6 : f32
    %14 = vector.broadcast %cst_7 : f32 to vector<1x128xf32>
    %15 = arith.addf %13, %14 : vector<1x128xf32>
    %16 = math.rsqrt %15 : vector<1x128xf32>
    %c0_8 = arith.constant 0 : index
    %c0_9 = arith.constant 0 : index
    %17 = vector.load %arg2[%c0_8, %c0_9] : memref<1x128xf32, #tpu.memory_space<vmem>>, vector<1x128xf32>
    %18 = arith.mulf %16, %17 : vector<1x128xf32>
    %c0_10 = arith.constant 0 : index
    %c0_11 = arith.constant 0 : index
    %19 = vector.load %arg3[%c0_10, %c0_11] : memref<1x128xf32, #tpu.memory_space<vmem>>, vector<1x128xf32>
    %20 = arith.mulf %9, %18 : vector<1x128xf32>
    %21 = arith.subf %19, %20 : vector<1x128xf32>
    %22 = vector.broadcast %18 : vector<1x128xf32> to vector<392x128xf32>
    %23 = arith.mulf %2, %22 : vector<392x128xf32>
    %24 = vector.broadcast %21 : vector<1x128xf32> to vector<392x128xf32>
    %25 = arith.addf %23, %24 : vector<392x128xf32>
    %cst_12 = arith.constant 0.000000e+00 : f32
    %26 = vector.broadcast %cst_12 : f32 to vector<392x128xf32>
    %27 = arith.maximumf %25, %26 : vector<392x128xf32>
    %c0_13 = arith.constant 0 : index
    %c0_14 = arith.constant 0 : index
    %28 = vector.load %arg4[%c0_13, %c0_14] : memref<392x128xf32, #tpu.memory_space<vmem>>, vector<392x128xf32>
    tpu.vector_store %arg4[%c0_13, %c0_14], %27 {strides = array<i32>} : memref<392x128xf32, #tpu.memory_space<vmem>>, vector<392x128xf32>,
    return
  }
}

</mosaic_0001>

<bundles_post_ra>
// kernel: tpu_custom_call.1
= control target key start
LH: loop header
LB: loop body
LE: loop exit
PB: predicated region body
PF: predicated region fallthrough
CT: control target
= control target key end

     0   :  { %v1165_v1 = vmov 0.0   ;;  %vm1166_vm0 = vmmov 0   ;;  %vm287_vm1 = vcmask 1041408   ;;  %vm211_vm2 = vcmask 293888   ;;  %s1858_s0 = inlined_call_operand.vmem [shape: bf16[392,36], index: 0, kind: input, shape index: {}]   ;;  %s1859_s1 = inlined_call_operand.vmem [shape: bf16[36,128], index: 1, kind: input, shape index: {}]   ;;  %s1860_s2 = inlined_call_operand.vmem [shape: f32[1,128], index: 2, kind: input, shape index: {}]   ;;  %s1861_s3 = inlined_call_operand.vmem [shape: f32[1,128], index: 3, kind: input, shape index: {}]   ;;  %s1862_s4 = inlined_call_operand.hbm [shape: f32[392,128], index: 4, kind: output, shape index: {}]  }
   0x1   :  { %v1111_v0 = vld [vmem:[%s1859_s1] sm:$0xff]   ;;  %994 = vmatprep.subr.bf16.mxu0 %v1165_v1  ;;  %v1112_v2 = vld [vmem:[%s1859_s1 + $0x8] sm:$0xff]   ;;  %1100 = vmatprep.subr.bf16.mxu1 %v1165_v1  ;;  %v1113_v3 = vld [vmem:[%s1859_s1 + $0x10] ss:$0 sps:$4 sm:$0x33]  }
   0x2   :  { %995 = vmatpush3.bf16.msra.mxu0 %v1111_v0  ;;  %1103 = vmatpush3.bf16.msra.mxu1 %v1111_v0  ;;  %v289_v4 = vsel %vm287_vm1, %v1113_v3, 0  ;;  %v1114_v5 = vld [vmem:[%s1858_s0] sm:$0xff]   ;;  %v1121_v6 = vld [vmem:[%s1858_s0 + $0x68] sm:$0xff]   ;;  %v1123_v8 = vld [vmem:[%s1858_s0 + $0x70] sm:$0xff]  }
   0x3   :  { %996 = vmatprep.subr.bf16.mxu0 %v1165_v1  ;;  %1000 = vmatprep.mubr.msk.bf16.mxu0 %vm1166_vm0, %v1165_v1  ;;  %v1115_v7 = vld [vmem:[%s1858_s0 + $0x8] sm:$0xff]   ;;  %v1116_v9 = vld [vmem:[%s1858_s0 + $0x10] sm:$0xff]   ;;  %v1125_v10 = vld [vmem:[%s1858_s0 + $0x78] sm:$0xff]  }
   0x4   :  { %1101 = vmatprep.subr.bf16.mxu1 %v1165_v1  ;;  %1052 = vmatprep.mubr.msk.bf16.mxu1 %vm1166_vm0, %v1165_v1 }
   0x6   :  { %997 = vmatpush3.bf16.msra.mxu0 %v1112_v2  ;;  %1104 = vmatpush3.bf16.msra.mxu1 %v1112_v2 }
   0x7   :  { %998 = vmatprep.subr.bf16.mxu0 %v1165_v1  ;;  %1102 = vmatprep.subr.bf16.mxu1 %v1165_v1 }
   0xa   :  { %999 = vmatpush3.bf16.msra.mxu0 %v289_v4  ;;  %1105 = vmatpush3.bf16.msra.mxu1 %v289_v4 }
   0xd   :  { %1001 = vmatmul.mubr.msk.bf16.vlgmr.msra.gmra.mrb[0].mxu0 %vm211_vm2, %v1114_v5  ;;  %1053 = vmatmul.mubr.msk.bf16.vlgmr.msra.gmra.mrb[0].mxu1 %vm211_vm2, %v1121_v6 }
   0xe   :  { %1004 = vmatprep.mubr.msk.bf16.mxu0 %vm1166_vm0, %v1165_v1  ;;  %1056 = vmatprep.mubr.msk.bf16.mxu1 %vm1166_vm0, %v1165_v1 }
  0x15   :  { %1005 = vmatmul.mubr.msk.bf16.gmra.mrb[4].mxu0 %vm211_vm2, %v1115_v7  ;;  %1057 = vmatmul.mubr.msk.bf16.gmra.mrb[4].mxu1 %vm211_vm2, %v1123_v8 }
  0x16   :  { %1008 = vmatprep.mubr.msk.bf16.mxu0 %vm1166_vm0, %v1165_v1  ;;  %1060 = vmatprep.mubr.msk.bf16.mxu1 %vm1166_vm0, %v1165_v1 }
  0x17   :  { %9 = vsyncpa [#allocation3], 0  ;;  %v1117_v11 = vld [vmem:[%s1858_s0 + $0x18] sm:$0xff]   ;;  %v1127_v12 = vld [vmem:[%s1858_s0 + $0x80] sm:$0xff]  }
  0x18   :  { %v1118_v13 = vld [vmem:[%s1858_s0 + $0x20] sm:$0xff]   ;;  %v1129_v14 = vld [vmem:[%s1858_s0 + $0x88] sm:$0xff]   ;;  %v1131_v16 = vld [vmem:[%s1858_s0 + $0x90] sm:$0xff]  }
  0x19   :  { %v1119_v15 = vld [vmem:[%s1858_s0 + $0x28] sm:$0xff]   ;;  %v1120_v17 = vld [vmem:[%s1858_s0 + $0x30] sm:$0xff]   ;;  %v1133_v18 = vld [vmem:[%s1858_s0 + $0x98] sm:$0xff]  }
  0x1a   :  { %v1122_v19 = vld [vmem:[%s1858_s0 + $0x38] sm:$0xff]   ;;  %v1134_v20 = vld [vmem:[%s1858_s0 + $0xa0] sm:$0xff]   ;;  %v1135_v22 = vld [vmem:[%s1858_s0 + $0xa8] sm:$0xff]  }
  0x1b   :  { %v1124_v21 = vld [vmem:[%s1858_s0 + $0x40] sm:$0xff]   ;;  %v1126_v23 = vld [vmem:[%s1858_s0 + $0x48] sm:$0xff]   ;;  %v1136_v24 = vld [vmem:[%s1858_s0 + $0xb0] sm:$0xff]  }
  0x1c   :  { %v1128_v25 = vld [vmem:[%s1858_s0 + $0x50] sm:$0xff]   ;;  %v1137_v26 = vld [vmem:[%s1858_s0 + $0xb8] sm:$0xff]   ;;  %v1138_v28 = vld [vmem:[%s1858_s0 + $0xc0] ss:$0 sps:$4 sm:$0xff]  }
  0x1d   :  { %1009 = vmatmul.mubr.msk.bf16.gmra.mrb[8].mxu0 %vm211_vm2, %v1116_v9  ;;  %1061 = vmatmul.mubr.msk.bf16.gmra.mrb[8].mxu1 %vm211_vm2, %v1125_v10  ;;  %v1130_v27 = vld [vmem:[%s1858_s0 + $0x58] sm:$0xff]   ;;  %v1132_v29 = vld [vmem:[%s1858_s0 + $0x60] sm:$0xff]  }
  0x1e   :  { %1012 = vmatprep.mubr.msk.bf16.mxu0 %vm1166_vm0, %v1165_v1  ;;  %1064 = vmatprep.mubr.msk.bf16.mxu1 %vm1166_vm0, %v1165_v1 }
  0x25   :  { %1013 = vmatmul.mubr.msk.bf16.gmra.mrb[12].mxu0 %vm211_vm2, %v1117_v11  ;;  %1065 = vmatmul.mubr.msk.bf16.gmra.mrb[12].mxu1 %vm211_vm2, %v1127_v12 }
  0x26   :  { %1016 = vmatprep.mubr.msk.bf16.mxu0 %vm1166_vm0, %v1165_v1  ;;  %1068 = vmatprep.mubr.msk.bf16.mxu1 %vm1166_vm0, %v1165_v1 }
  0x2d   :  { %1017 = vmatmul.mubr.msk.bf16.gmra.mrb[16].mxu0 %vm211_vm2, %v1118_v13  ;;  %1069 = vmatmul.mubr.msk.bf16.gmra.mrb[16].mxu1 %vm211_vm2, %v1129_v14 }
  0x2e   :  { %1020 = vmatprep.mubr.msk.bf16.mxu0 %vm1166_vm0, %v1165_v1  ;;  %1072 = vmatprep.mubr.msk.bf16.mxu1 %vm1166_vm0, %v1165_v1 }
  0x35   :  { %1021 = vmatmul.mubr.msk.bf16.gmra.mrb[20].mxu0 %vm211_vm2, %v1119_v15  ;;  %1073 = vmatmul.mubr.msk.bf16.gmra.mrb[20].mxu1 %vm211_vm2, %v1131_v16 }
  0x36   :  { %1024 = vmatprep.mubr.msk.bf16.mxu0 %vm1166_vm0, %v1165_v1  ;;  %1076 = vmatprep.mubr.msk.bf16.mxu1 %vm1166_vm0, %v1165_v1 }
  0x3d   :  { %1025 = vmatmul.mubr.msk.bf16.gmra.mrb[24].mxu0 %vm211_vm2, %v1120_v17  ;;  %1077 = vmatmul.mubr.msk.bf16.gmra.mrb[24].mxu1 %vm211_vm2, %v1133_v18 }
  0x3e   :  { %1028 = vmatprep.mubr.msk.bf16.mxu0 %vm1166_vm0, %v1165_v1  ;;  %1080 = vmatprep.mubr.msk.bf16.mxu1 %vm1166_vm0, %v1165_v1 }
  0x45   :  { %1029 = vmatmul.mubr.msk.bf16.gmra.mrb[28].mxu0 %vm211_vm2, %v1122_v19  ;;  %1081 = vmatmul.mubr.msk.bf16.gmra.mrb[28].mxu1 %vm211_vm2, %v1134_v20 }
  0x46   :  { %1032 = vmatprep.mubr.msk.bf16.mxu0 %vm1166_vm0, %v1165_v1  ;;  %1084 = vmatprep.mubr.msk.bf16.mxu1 %vm1166_vm0, %v1165_v1 }
  0x4d   :  { %1033 = vmatmul.mubr.msk.bf16.gmra.mrb[32].mxu0 %vm211_vm2, %v1124_v21  ;;  %1085 = vmatmul.mubr.msk.bf16.gmra.mrb[32].mxu1 %vm211_vm2, %v1135_v22 }
  0x4e   :  { %1036 = vmatprep.mubr.msk.bf16.mxu0 %vm1166_vm0, %v1165_v1  ;;  %1088 = vmatprep.mubr.msk.bf16.mxu1 %vm1166_vm0, %v1165_v1 }
  0x55   :  { %1037 = vmatmul.mubr.msk.bf16.gmra.mrb[36].mxu0 %vm211_vm2, %v1126_v23  ;;  %1089 = vmatmul.mubr.msk.bf16.gmra.mrb[36].mxu1 %vm211_vm2, %v1136_v24 }
  0x56   :  { %1040 = vmatprep.mubr.msk.bf16.mxu0 %vm1166_vm0, %v1165_v1  ;;  %1092 = vmatprep.mubr.msk.bf16.mxu1 %vm1166_vm0, %v1165_v1 }
  0x5d   :  { %1041 = vmatmul.mubr.msk.bf16.gmra.mrb[40].mxu0 %vm211_vm2, %v1128_v25  ;;  %1093 = vmatmul.mubr.msk.bf16.gmra.mrb[40].mxu1 %vm211_vm2, %v1137_v26 }
  0x5e   :  { %1044 = vmatprep.mubr.msk.bf16.mxu0 %vm1166_vm0, %v1165_v1  ;;  %1096 = vmatprep.mubr.msk.bf16.mxu1 %vm1166_vm0, %v1165_v1 }
  0x65   :  { %1045 = vmatmul.mubr.msk.bf16.gmra.mrb[44].mxu0 %vm211_vm2, %v1130_v27  ;;  %1097 = vmatmul.mubr.msk.bf16.gmra.mrb[44].mxu1 %vm211_vm2, %v1138_v28 }
  0x66   :  { %1048 = vmatprep.mubr.msk.bf16.mxu0 %vm1166_vm0, %v1165_v1 }
  0x6d   :  { %1049 = vmatmul.mubr.msk.bf16.gmra.mrb[48].mxu0 %vm211_vm2, %v1132_v29 }
  0xe0   :  { %v1360_v30 = vpop.f32.mrb[0].mxu0  ;;  %v1362_v31 = vpop.f32.mrb[0].mxu1 }
  0xe1   :  { %v1002_v32 = vpop.f32.mrb[1].mxu0  ;;  %v1054_v33 = vpop.f32.mrb[1].mxu1  ;;  %v577_v36 = vmul.f32 %v1360_v30, %v1360_v30 }
  0xe2   :  { %v1364_v34 = vpop.f32.mrb[2].mxu0  ;;  %v1366_v35 = vpop.f32.mrb[2].mxu1 }
  0xe3   :  { %v523_v37 = vadd.f32 %v1364_v34, %v1360_v30  ;;  %v578_v38 = vmul.f32 %v1364_v34, %v1364_v34  ;;  %v1003_v39 = vpop.f32.mrb[3].mxu0  ;;  %v1055_v40 = vpop.f32.mrb[3].mxu1 }
  0xe5   :  { %v626_v41 = vadd.f32 %v578_v38, %v577_v36 }
  0xe8   :  { %v1374_v42 = vpop.f32.mrb[4].mxu0  ;;  %v1376_v43 = vpop.f32.mrb[4].mxu1 }
  0xe9   :  { %v524_v44 = vadd.f32 %v523_v37, %v1374_v42  ;;  %v579_v45 = vmul.f32 %v1374_v42, %v1374_v42  ;;  %v1006_v46 = vpop.f32.mrb[5].mxu0  ;;  %v1058_v47 = vpop.f32.mrb[5].mxu1 }
  0xea   :  { %v1381_v48 = vpop.f32.mrb[6].mxu0  ;;  %v1383_v49 = vpop.f32.mrb[6].mxu1 }
  0xeb   :  { %v627_v50 = vadd.f32 %v626_v41, %v579_v45  ;;  %v525_v51 = vadd.f32 %v524_v44, %v1381_v48  ;;  %v580_v52 = vmul.f32 %v1381_v48, %v1381_v48  ;;  %v1007_v53 = vpop.f32.mrb[7].mxu0  ;;  %v1059_v54 = vpop.f32.mrb[7].mxu1 }
  0xed   :  { %v628_v55 = vadd.f32 %v627_v50, %v580_v52 }
  0xf0   :  { %v1388_v56 = vpop.f32.mrb[8].mxu0  ;;  %v1390_v57 = vpop.f32.mrb[8].mxu1 }
  0xf1   :  { %v526_v58 = vadd.f32 %v525_v51, %v1388_v56  ;;  %v581_v59 = vmul.f32 %v1388_v56, %v1388_v56  ;;  %v1010_v60 = vpop.f32.mrb[9].mxu0  ;;  %v1062_v61 = vpop.f32.mrb[9].mxu1 }
  0xf2   :  { %v1395_v62 = vpop.f32.mrb[10].mxu0  ;;  %v1397_v63 = vpop.f32.mrb[10].mxu1 }
  0xf3   :  { %v629_v0 = vadd.f32 %v628_v55, %v581_v59  ;;  %v527_v1 = vadd.f32 %v526_v58, %v1395_v62  ;;  %v582_v2 = vmul.f32 %v1395_v62, %v1395_v62  ;;  %v1011_v3 = vpop.f32.mrb[11].mxu0  ;;  %v1063_v4 = vpop.f32.mrb[11].mxu1 }
  0xf5   :  { %v630_v5 = vadd.f32 %v629_v0, %v582_v2 }
  0xf8   :  { %v1402_v6 = vpop.f32.mrb[12].mxu0  ;;  %v1404_v7 = vpop.f32.mrb[12].mxu1 }
  0xf9   :  { %v528_v8 = vadd.f32 %v527_v1, %v1402_v6  ;;  %v583_v9 = vmul.f32 %v1402_v6, %v1402_v6  ;;  %v1014_v10 = vpop.f32.mrb[13].mxu0  ;;  %v1066_v11 = vpop.f32.mrb[13].mxu1 }
  0xfa   :  { %v1409_v12 = vpop.f32.mrb[14].mxu0  ;;  %v1411_v13 = vpop.f32.mrb[14].mxu1 }
  0xfb   :  { %v631_v14 = vadd.f32 %v630_v5, %v583_v9  ;;  %v529_v15 = vadd.f32 %v528_v8, %v1409_v12  ;;  %v584_v16 = vmul.f32 %v1409_v12, %v1409_v12  ;;  %v1015_v17 = vpop.f32.mrb[15].mxu0  ;;  %v1067_v18 = vpop.f32.mrb[15].mxu1 }
  0xfd   :  { %v632_v19 = vadd.f32 %v631_v14, %v584_v16 }
 0x100   :  { %v1416_v20 = vpop.f32.mrb[16].mxu0  ;;  %v1418_v21 = vpop.f32.mrb[16].mxu1 }
 0x101   :  { %v530_v22 = vadd.f32 %v529_v15, %v1416_v20  ;;  %v585_v23 = vmul.f32 %v1416_v20, %v1416_v20  ;;  %v1018_v24 = vpop.f32.mrb[17].mxu0  ;;  %v1070_v25 = vpop.f32.mrb[17].mxu1 }
 0x102   :  { %v1423_v26 = vpop.f32.mrb[18].mxu0  ;;  %v1425_v27 = vpop.f32.mrb[18].mxu1 }
 0x103   :  { %v633_v28 = vadd.f32 %v632_v19, %v585_v23  ;;  %v531_v29 = vadd.f32 %v530_v22, %v1423_v26  ;;  %v586_v32 = vmul.f32 %v1423_v26, %v1423_v26  ;;  %v1019_v33 = vpop.f32.mrb[19].mxu0  ;;  %v1071_v36 = vpop.f32.mrb[19].mxu1 }
 0x105   :  { %v634_v37 = vadd.f32 %v633_v28, %v586_v32 }
 0x108   :  { %v1430_v38 = vpop.f32.mrb[20].mxu0  ;;  %v1432_v39 = vpop.f32.mrb[20].mxu1 }
 0x109   :  { %v532_v40 = vadd.f32 %v531_v29, %v1430_v38  ;;  %v587_v41 = vmul.f32 %v1430_v38, %v1430_v38  ;;  %v1022_v44 = vpop.f32.mrb[21].mxu0  ;;  %v1074_v45 = vpop.f32.mrb[21].mxu1 }
 0x10a   :  { %v1437_v46 = vpop.f32.mrb[22].mxu0  ;;  %v1439_v47 = vpop.f32.mrb[22].mxu1 }
 0x10b   :  { %v635_v50 = vadd.f32 %v634_v37, %v587_v41  ;;  %v533_v51 = vadd.f32 %v532_v40, %v1437_v46  ;;  %v588_v52 = vmul.f32 %v1437_v46, %v1437_v46  ;;  %v1023_v53 = vpop.f32.mrb[23].mxu0  ;;  %v1075_v54 = vpop.f32.mrb[23].mxu1 }
 0x10d   :  { %v636_v55 = vadd.f32 %v635_v50, %v588_v52 }
 0x110   :  { %v1444_v58 = vpop.f32.mrb[24].mxu0  ;;  %v1446_v59 = vpop.f32.mrb[24].mxu1 }
 0x111   :  { %v534_v60 = vadd.f32 %v533_v51, %v1444_v58  ;;  %v589_v61 = vmul.f32 %v1444_v58, %v1444_v58  ;;  %v1026_v0 = vpop.f32.mrb[25].mxu0  ;;  %v1078_v1 = vpop.f32.mrb[25].mxu1 }
 0x112   :  { %v1451_v2 = vpop.f32.mrb[26].mxu0  ;;  %v1453_v3 = vpop.f32.mrb[26].mxu1 }
 0x113   :  { %v637_v4 = vadd.f32 %v636_v55, %v589_v61  ;;  %v535_v5 = vadd.f32 %v534_v60, %v1451_v2  ;;  %v590_v8 = vmul.f32 %v1451_v2, %v1451_v2  ;;  %v1027_v9 = vpop.f32.mrb[27].mxu0  ;;  %v1079_v10 = vpop.f32.mrb[27].mxu1 }
 0x115   :  { %v638_v11 = vadd.f32 %v637_v4, %v590_v8 }
 0x118   :  { %v1458_v14 = vpop.f32.mrb[28].mxu0  ;;  %v1460_v15 = vpop.f32.mrb[28].mxu1 }
 0x119   :  { %1871 = vst [vmem:[#allocation5_spill] sm:$0xff] %v1460_v15  ;;  %v536_v16 = vadd.f32 %v535_v5, %v1458_v14  ;;  %v591_v17 = vmul.f32 %v1458_v14, %v1458_v14  ;;  %v1030_v18 = vpop.f32.mrb[29].mxu0  ;;  %v1082_v19 = vpop.f32.mrb[29].mxu1 }
 0x11a   :  { %v1465_v22 = vpop.f32.mrb[30].mxu0  ;;  %v1467_v23 = vpop.f32.mrb[30].mxu1 }
 0x11b   :  { %1872 = vst [vmem:[#allocation6_spill] sm:$0xff] %v1467_v23  ;;  %v639_v24 = vadd.f32 %v638_v11, %v591_v17  ;;  %v537_v25 = vadd.f32 %v536_v16, %v1465_v22  ;;  %v592_v28 = vmul.f32 %v1465_v22, %v1465_v22  ;;  %v1031_v29 = vpop.f32.mrb[31].mxu0  ;;  %v1083_v32 = vpop.f32.mrb[31].mxu1 }
 0x11d   :  { %v640_v33 = vadd.f32 %v639_v24, %v592_v28 }
 0x120   :  { %v1472_v36 = vpop.f32.mrb[32].mxu0  ;;  %v1474_v37 = vpop.f32.mrb[32].mxu1 }
 0x121   :  { %1873 = vst [vmem:[#allocation7_spill] sm:$0xff] %v1474_v37  ;;  %v538_v40 = vadd.f32 %v537_v25, %v1472_v36  ;;  %v593_v41 = vmul.f32 %v1472_v36, %v1472_v36  ;;  %v1034_v44 = vpop.f32.mrb[33].mxu0  ;;  %v1086_v45 = vpop.f32.mrb[33].mxu1 }
 0x122   :  { %v1479_v50 = vpop.f32.mrb[34].mxu0  ;;  %v1481_v51 = vpop.f32.mrb[34].mxu1 }
 0x123   :  { %1874 = vst [vmem:[#allocation8_spill] sm:$0xff] %v1481_v51  ;;  %v641_v52 = vadd.f32 %v640_v33, %v593_v41  ;;  %v539_v53 = vadd.f32 %v538_v40, %v1479_v50  ;;  %v594_v54 = vmul.f32 %v1479_v50, %v1479_v50  ;;  %v1035_v55 = vpop.f32.mrb[35].mxu0  ;;  %v1087_v60 = vpop.f32.mrb[35].mxu1 }
 0x125   :  { %v642_v61 = vadd.f32 %v641_v52, %v594_v54 }
 0x128   :  { %v1486_v0 = vpop.f32.mrb[36].mxu0  ;;  %v1488_v1 = vpop.f32.mrb[36].mxu1 }
 0x129   :  { %1875 = vst [vmem:[#allocation9_spill] sm:$0xff] %v1488_v1  ;;  %v540_v4 = vadd.f32 %v539_v53, %v1486_v0  ;;  %v595_v5 = vmul.f32 %v1486_v0, %v1486_v0  ;;  %v1038_v8 = vpop.f32.mrb[37].mxu0  ;;  %v1090_v9 = vpop.f32.mrb[37].mxu1 }
 0x12a   :  { %v1493_v10 = vpop.f32.mrb[38].mxu0  ;;  %v1495_v11 = vpop.f32.mrb[38].mxu1 }
 0x12b   :  { %1876 = vst [vmem:[#allocation10_spill] sm:$0xff] %v1495_v11  ;;  %v643_v16 = vadd.f32 %v642_v61, %v595_v5  ;;  %v541_v17 = vadd.f32 %v540_v4, %v1493_v10  ;;  %v596_v18 = vmul.f32 %v1493_v10, %v1493_v10  ;;  %v1039_v19 = vpop.f32.mrb[39].mxu0  ;;  %v1091_v24 = vpop.f32.mrb[39].mxu1 }
 0x12d   :  { %v644_v25 = vadd.f32 %v643_v16, %v596_v18 }
 0x130   :  { %v1500_v28 = vpop.f32.mrb[40].mxu0  ;;  %v1502_v29 = vpop.f32.mrb[40].mxu1 }
 0x131   :  { %1877 = vst [vmem:[#allocation11_spill] sm:$0xff] %v1502_v29  ;;  %v542_v32 = vadd.f32 %v541_v17, %v1500_v28  ;;  %v597_v33 = vmul.f32 %v1500_v28, %v1500_v28  ;;  %v1042_v40 = vpop.f32.mrb[41].mxu0  ;;  %v1094_v41 = vpop.f32.mrb[41].mxu1 }
 0x132   :  { %v1507_v44 = vpop.f32.mrb[42].mxu0  ;;  %v1509_v45 = vpop.f32.mrb[42].mxu1 }
 0x133   :  { %1878 = vst [vmem:[#allocation12_spill] sm:$0xff] %v1509_v45  ;;  %v645_v52 = vadd.f32 %v644_v25, %v597_v33  ;;  %v543_v53 = vadd.f32 %v542_v32, %v1507_v44  ;;  %v598_v54 = vmul.f32 %v1507_v44, %v1507_v44  ;;  %v1043_v55 = vpop.f32.mrb[43].mxu0  ;;  %v1095_v60 = vpop.f32.mrb[43].mxu1 }
 0x135   :  { %v646_v61 = vadd.f32 %v645_v52, %v598_v54 }
 0x138   :  { %v1514_v4 = vpop.f32.mrb[44].mxu0  ;;  %v1516_v5 = vpop.f32.mrb[44].mxu1 }
 0x139   :  { %v544_v8 = vadd.f32 %v543_v53, %v1514_v4  ;;  %v599_v9 = vmul.f32 %v1514_v4, %v1514_v4  ;;  %v1046_v16 = vpop.f32.mrb[45].mxu0  ;;  %v1098_v17 = vpop.f32.mrb[45].mxu1 }
 0x13a   :  { %v1521_v18 = vpop.f32.mrb[46].mxu0  ;;  %v520_v19 = vpop.f32.mrb[46].mxu1  ;;  %v603_v17 = vmul.f32 %v1362_v31, %v1362_v31 }
 0x13b   :  { %v647_v24 = vadd.f32 %v646_v61, %v599_v9  ;;  %v545_v25 = vadd.f32 %v544_v8, %v1521_v18  ;;  %v600_v32 = vmul.f32 %v1521_v18, %v1521_v18  ;;  %v1047_v33 = vpop.f32.mrb[47].mxu0  ;;  %v1099_v40 = vpop.f32.mrb[47].mxu1 }
 0x13c   :  { %v605_v40 = vmul.f32 %v1376_v43, %v1376_v43 }
 0x13d   :  { %v648_v41 = vadd.f32 %v647_v24, %v600_v32 }
 0x140   :  { %v1526_v52 = vpop.f32.mrb[48].mxu0 }
 0x141   :  { %v546_v53 = vadd.f32 %v545_v25, %v1526_v52  ;;  %v601_v54 = vmul.f32 %v1526_v52, %v1526_v52  ;;  %v1050_v55 = vpop.f32.mrb[49].mxu0  ;;  %v604_v25 = vmul.f32 %v1366_v35, %v1366_v35 }
 0x142   :  { %v1531_v60 = vpop.f32.mrb[50].mxu0 }
 0x143   :  { %v649_v16 = vadd.f32 %v648_v41, %v601_v54  ;;  %v547_v61 = vadd.f32 %v546_v53, %v1531_v60  ;;  %v602_v8 = vmul.f32 %v1531_v60, %v1531_v60  ;;  %v1051_v9 = vpop.f32.mrb[51].mxu0  ;;  %v606_v54 = vmul.f32 %v1383_v49, %v1383_v49 }
 0x145   :  { %v548_v19 = vadd.f32 %v547_v61, %v1362_v31  ;;  %v650_v24 = vadd.f32 %v649_v16, %v602_v8  ;;  %v607_v16 = vmul.f32 %v1390_v57, %v1390_v57 }
 0x147   :  { %v549_v32 = vadd.f32 %v548_v19, %v1366_v35  ;;  %v651_v33 = vadd.f32 %v650_v24, %v603_v17  ;;  %v608_v17 = vmul.f32 %v1397_v63, %v1397_v63 }
 0x149   :  { %v550_v41 = vadd.f32 %v549_v32, %v1376_v43  ;;  %v652_v53 = vadd.f32 %v651_v33, %v604_v25  ;;  %v609_v25 = vmul.f32 %v1404_v7, %v1404_v7 }
 0x14b   :  { %v551_v55 = vadd.f32 %v550_v41, %v1383_v49  ;;  %v653_v9 = vadd.f32 %v652_v53, %v605_v40  ;;  %v610_v40 = vmul.f32 %v1411_v13, %v1411_v13 }
 0x14d   :  { %v552_v61 = vadd.f32 %v551_v55, %v1390_v57  ;;  %v654_v8 = vadd.f32 %v653_v9, %v606_v54  ;;  %v611_v54 = vmul.f32 %v1418_v21, %v1418_v21 }
 0x14f   :  { %v553_v19 = vadd.f32 %v552_v61, %v1397_v63  ;;  %v655_v24 = vadd.f32 %v654_v8, %v607_v16  ;;  %v612_v16 = vmul.f32 %v1425_v27, %v1425_v27 }
 0x151   :  { %v656_v32 = vadd.f32 %v655_v24, %v608_v17  ;;  %v554_v33 = vadd.f32 %v553_v19, %v1404_v7  ;;  %v613_v17 = vmul.f32 %v1432_v39, %v1432_v39 }
 0x153   :  { %v555_v41 = vadd.f32 %v554_v33, %v1411_v13  ;;  %v657_v53 = vadd.f32 %v656_v32, %v609_v25  ;;  %v614_v25 = vmul.f32 %v1439_v47, %v1439_v47 }
 0x155   :  { %v556_v55 = vadd.f32 %v555_v41, %v1418_v21  ;;  %v658_v9 = vadd.f32 %v657_v53, %v610_v40  ;;  %v615_v41 = vmul.f32 %v1446_v59, %v1446_v59 }
 0x157   :  { %v557_v61 = vadd.f32 %v556_v55, %v1425_v27  ;;  %v659_v8 = vadd.f32 %v658_v9, %v611_v54  ;;  %v616_v9 = vmul.f32 %v1453_v3, %v1453_v3 }
 0x159   :  { %v558_v19 = vadd.f32 %v557_v61, %v1432_v39  ;;  %v660_v24 = vadd.f32 %v659_v8, %v612_v16  ;;  %v617_v8 = vmul.f32 %v1460_v15, %v1460_v15 }
 0x15b   :  { %v559_v32 = vadd.f32 %v558_v19, %v1439_v47  ;;  %v661_v33 = vadd.f32 %v660_v24, %v613_v17  ;;  %v618_v24 = vmul.f32 %v1467_v23, %v1467_v23 }
 0x15d   :  { %v560_v40 = vadd.f32 %v559_v32, %v1446_v59  ;;  %v662_v53 = vadd.f32 %v661_v33, %v614_v25  ;;  %v619_v33 = vmul.f32 %v1474_v37, %v1474_v37 }
 0x15f   :  { %v663_v55 = vadd.f32 %v662_v53, %v615_v41  ;;  %v561_v54 = vadd.f32 %v560_v40, %v1453_v3  ;;  %v620_v53 = vmul.f32 %v1481_v51, %v1481_v51 }
 0x161   :  { %v664_v61 = vadd.f32 %v663_v55, %v616_v9  ;;  %v562_v16 = vadd.f32 %v561_v54, %v1460_v15  ;;  %v621_v9 = vmul.f32 %v1488_v1, %v1488_v1 }
 0x163   :  { %v665_v19 = vadd.f32 %v664_v61, %v617_v8  ;;  %v563_v17 = vadd.f32 %v562_v16, %v1467_v23  ;;  %v622_v8 = vmul.f32 %v1495_v11, %v1495_v11 }
 0x165   :  { %v666_v32 = vadd.f32 %v665_v19, %v618_v24  ;;  %v564_v25 = vadd.f32 %v563_v17, %v1474_v37  ;;  %v623_v24 = vmul.f32 %v1502_v29, %v1502_v29 }
 0x167   :  { %v667_v40 = vadd.f32 %v666_v32, %v619_v33  ;;  %v565_v41 = vadd.f32 %v564_v25, %v1481_v51  ;;  %v624_v33 = vmul.f32 %v1509_v45, %v1509_v45 }
 0x169   :  { %v668_v55 = vadd.f32 %v667_v40, %v620_v53  ;;  %v566_v54 = vadd.f32 %v565_v41, %v1488_v1  ;;  %v625_v40 = vmul.f32 %v1516_v5, %v1516_v5 }
 0x16b   :  { %v669_v61 = vadd.f32 %v668_v55, %v621_v9  ;;  %v567_v16 = vadd.f32 %v566_v54, %v1495_v11 }
 0x16d   :  { %v670_v19 = vadd.f32 %v669_v61, %v622_v8  ;;  %v568_v17 = vadd.f32 %v567_v16, %v1502_v29 }
 0x16f   :  { %v671_v32 = vadd.f32 %v670_v19, %v623_v24  ;;  %v569_v25 = vadd.f32 %v568_v17, %v1509_v45 }
 0x171   :  { %v672_v41 = vadd.f32 %v671_v32, %v624_v33  ;;  %v570_v53 = vadd.f32 %v569_v25, %v1516_v5  ;;  %v691_v25 = vlaneseq }
 0x173   :  { %v571_v55 = vrot.slane %v570_v53, 4  ;;  %v673_v54 = vadd.f32 %v672_v41, %v625_v40  ;;  %v692_v33 = vshrl.u32 %v691_v25, 7  ;;  %v686_v40 = vld [vmem:[%s1860_s2] sm:$0x1]  ;;  %v1879_v25 = vld [vmem:[#allocation5_spill] sm:$0xff]  ;;  %s1167_s2 = smov [#allocation2]  }
 0x175   :  { %v572_v9 = vadd.f32 %v571_v55, %v570_v53  ;;  %v674_v61 = vrot.slane %v673_v54, 4  ;;  %v693_v41 = vsub.s32 0, %v692_v33  ;;  %v1880_v33 = vld [vmem:[#allocation6_spill] sm:$0xff] }
 0x177   :  { %v573_v16 = vrot.slane %v572_v9, 2  ;;  %v675_v8 = vadd.f32 %v674_v61, %v673_v54 }
 0x179   :  { %v574_v11 = vadd.f32 %v573_v16, %v572_v9  ;;  %v676_v29 = vrot.slane %v675_v8, 2 }
 0x17b   :  { %v575_v19 = vrot.slane %v574_v11, 1  ;;  %v677_v24 = vadd.f32 %v676_v29, %v675_v8 }
 0x17d   :  { %v576_v17 = vadd.f32 %v575_v19, %v574_v11  ;;  %v678_v1 = vrot.slane %v677_v24, 1  ;;  %v688_v11 = vld [vmem:[%s1861_s3] sm:$0x1]  ;;  %s902_s3 = sshll.u32 %s1167_s2, 4  ;;  %s903_s3 = int_to_ptr.vmem [resolvable:$true] %s902_s3 }
 0x17e   :  { %s1141_s20 = scalar_lea.vmem %s903_s3, 6272  ;;  %p1146_p1 = scmp.lt.s32.totalorder %s903_s3, %s903_s3 }
 0x17f   :  { %v679_v51 = vadd.f32 %v678_v1, %v677_v24  ;;  %v680_v45 = vmul.f32 0.0025510204, %v576_v17  ;;  %p1142_p0 = scmp.ne.s32.totalorder %s903_s3, %s1141_s20  ;;  %p1147_p2 = scmp.lt.s32.totalorder %s1141_s20, %s1141_s20 }
 0x181   :  { %v681_v37 = vmul.f32 0.0025510204, %v679_v51  ;;  %v682_v23 = vmul.f32 %v680_v45, %v680_v45  ;;  %p1148_p3 = por %p1147_p2, %p1146_p1 }
 0x183   :  { %v683_v15 = vsub.f32 %v681_v37, %v682_v23  ;;  %p1149_p4 = pnand %p1148_p3, %p1142_p0 }
 0x185   :  { %v684_v32 = vadd.f32 1e-05, %v683_v15 }
 0x187   :  { %1139 = vrsqrt.f32 %v684_v32 }
 0x191   :  { %v1140_v53 = vpop.eup %1139 }
 0x192   :  { %v687_v55 = vmul.f32 %v1140_v53, %v686_v40  ;;  %v1881_v40 = vld [vmem:[#allocation7_spill] sm:$0xff]  ;;  %v1883_v53 = vld [vmem:[#allocation9_spill] sm:$0xff] }
 0x194   :  { %v689_v1 = vmul.f32 %v687_v55, %v680_v45  ;;  %v694_v29 = vrot.slane %v687_v55, %v693_v41  ;;  %v1884_v55 = vld [vmem:[#allocation10_spill] sm:$0xff] }
 0x196   :  { %v690_v51 = vsub.f32 %v688_v11, %v689_v1  ;;  %v743_v23 = vmul.f32 %v694_v29, %v1516_v5  ;;  %v695_v15 = vmul.f32 %v694_v29, %v1360_v30  ;;  %v696_v37 = vmul.f32 %v694_v29, %v1364_v34  ;;  %v1885_v11 = vld [vmem:[#allocation11_spill] sm:$0xff]  ;;  %v1886_v1 = vld [vmem:[#allocation12_spill] sm:$0xff] }
 0x197   :  { %v697_v54 = vmul.f32 %v694_v29, %v1374_v42  ;;  %v698_v9 = vmul.f32 %v694_v29, %v1381_v48  ;;  %v699_v61 = vmul.f32 %v694_v29, %v1388_v56  ;;  %v700_v16 = vmul.f32 %v694_v29, %v1395_v62 }
 0x198   :  { %v1618_v8 = vrot.slane %v690_v51, %v693_v41  ;;  %v701_v45 = vmul.f32 %v694_v29, %v1402_v6  ;;  %v702_v19 = vmul.f32 %v694_v29, %v1409_v12  ;;  %v703_v5 = vmul.f32 %v694_v29, %v1416_v20  ;;  %v1882_v41 = vld [vmem:[#allocation8_spill] sm:$0xff] }
 0x199   :  { %v704_v30 = vmul.f32 %v694_v29, %v1423_v26  ;;  %v705_v34 = vmul.f32 %v694_v29, %v1430_v38  ;;  %v706_v42 = vmul.f32 %v694_v29, %v1437_v46  ;;  %v707_v48 = vmul.f32 %v694_v29, %v1444_v58 }
 0x19a   :  { %v798_v56 = vadd.f32 %v1618_v8, %v743_v23  ;;  %v708_v62 = vmul.f32 %v694_v29, %v1451_v2  ;;  %v709_v24 = vmul.f32 %v694_v29, %v1458_v14  ;;  %v710_v6 = vmul.f32 %v694_v29, %v1465_v22 }
 0x19b   :  { %v711_v12 = vmul.f32 %v694_v29, %v1472_v36  ;;  %v712_v20 = vmul.f32 %v694_v29, %v1479_v50  ;;  %v713_v26 = vmul.f32 %v694_v29, %v1486_v0  ;;  %v714_v38 = vmul.f32 %v694_v29, %v1493_v10 }
 0x19c   :  { %v847_v17 = vmax.f32 %v798_v56, 0.0  ;;  %v715_v46 = vmul.f32 %v694_v29, %v1500_v28  ;;  %v716_v58 = vmul.f32 %v694_v29, %v1507_v44  ;;  %v717_v32 = vmul.f32 %v694_v29, %v1514_v4 }
 0x19d   :  { %v718_v2 = vmul.f32 %v694_v29, %v1521_v18  ;;  %v719_v14 = vmul.f32 %v694_v29, %v1526_v52  ;;  %v720_v22 = vmul.f32 %v694_v29, %v1531_v60  ;;  %v721_v36 = vmul.f32 %v694_v29, %v1362_v31 }
 0x19e   :  { %896 = vst [vmem:[#allocation2 + $0x180] sm:$0xff] %v847_v17  ;;  %v722_v50 = vmul.f32 %v694_v29, %v1366_v35  ;;  %v723_v0 = vmul.f32 %v694_v29, %v1376_v43  ;;  %v724_v10 = vmul.f32 %v694_v29, %v1383_v49  ;;  %v725_v28 = vmul.f32 %v694_v29, %v1390_v57 }
 0x19f   :  { %v726_v44 = vmul.f32 %v694_v29, %v1397_v63  ;;  %v727_v4 = vmul.f32 %v694_v29, %v1404_v7  ;;  %v728_v18 = vmul.f32 %v694_v29, %v1411_v13  ;;  %v729_v52 = vmul.f32 %v694_v29, %v1418_v21 }
 0x1a0   :  { %v730_v60 = vmul.f32 %v694_v29, %v1425_v27  ;;  %v731_v31 = vmul.f32 %v694_v29, %v1432_v39  ;;  %v732_v35 = vmul.f32 %v694_v29, %v1439_v47  ;;  %v733_v43 = vmul.f32 %v694_v29, %v1446_v59 }
 0x1a1   :  { %v734_v49 = vmul.f32 %v694_v29, %v1453_v3  ;;  %v735_v57 = vmul.f32 %v694_v29, %v1879_v25  ;;  %v736_v63 = vmul.f32 %v694_v29, %v1880_v33  ;;  %v737_v7 = vmul.f32 %v694_v29, %v1881_v40 }
 0x1a2   :  { %v738_v13 = vmul.f32 %v694_v29, %v1882_v41  ;;  %v739_v21 = vmul.f32 %v694_v29, %v1883_v53  ;;  %v740_v27 = vmul.f32 %v694_v29, %v1884_v55  ;;  %v741_v39 = vmul.f32 %v694_v29, %v1885_v11 }
 0x1a3   :  { %v742_v47 = vmul.f32 %v694_v29, %v1886_v1  ;;  %v750_v59 = vadd.f32 %v1618_v8, %v695_v15  ;;  %v751_v3 = vadd.f32 %v1618_v8, %v696_v37  ;;  %v752_v51 = vadd.f32 %v1618_v8, %v697_v54 }
 0x1a4   :  { %v1667_v23 = vadd.f32 %v1618_v8, %v698_v9  ;;  %v1670_v56 = vadd.f32 %v1618_v8, %v699_v61  ;;  %v1673_v17 = vadd.f32 %v1618_v8, %v700_v16  ;;  %v1676_v25 = vadd.f32 %v1618_v8, %v701_v45 }
 0x1a5   :  { %v1679_v29 = vadd.f32 %v1618_v8, %v702_v19  ;;  %v1682_v15 = vadd.f32 %v1618_v8, %v703_v5  ;;  %v1685_v37 = vadd.f32 %v1618_v8, %v704_v30  ;;  %v1688_v54 = vadd.f32 %v1618_v8, %v705_v34 }
 0x1a6   :  { %v1691_v9 = vadd.f32 %v1618_v8, %v706_v42  ;;  %v1694_v61 = vadd.f32 %v1618_v8, %v707_v48  ;;  %v1697_v16 = vadd.f32 %v1618_v8, %v708_v62  ;;  %v1700_v45 = vadd.f32 %v1618_v8, %v709_v24 }
 0x1a7   :  { %v1703_v19 = vadd.f32 %v1618_v8, %v710_v6  ;;  %v1706_v5 = vadd.f32 %v1618_v8, %v711_v12  ;;  %v1709_v30 = vadd.f32 %v1618_v8, %v712_v20  ;;  %v1712_v34 = vadd.f32 %v1618_v8, %v713_v26 }
 0x1a8   :  { %v1715_v42 = vadd.f32 %v1618_v8, %v714_v38  ;;  %v1718_v48 = vadd.f32 %v1618_v8, %v715_v46  ;;  %v1721_v62 = vadd.f32 %v1618_v8, %v716_v58  ;;  %v1724_v24 = vadd.f32 %v1618_v8, %v717_v32 }
 0x1a9   :  { %v1727_v6 = vadd.f32 %v1618_v8, %v718_v2  ;;  %v1730_v12 = vadd.f32 %v1618_v8, %v719_v14  ;;  %v1733_v20 = vadd.f32 %v1618_v8, %v720_v22  ;;  %v1736_v26 = vadd.f32 %v1618_v8, %v721_v36 }
 0x1aa   :  { %v1739_v38 = vadd.f32 %v1618_v8, %v722_v50  ;;  %v1742_v46 = vadd.f32 %v1618_v8, %v723_v0  ;;  %v1745_v58 = vadd.f32 %v1618_v8, %v724_v10  ;;  %v1748_v32 = vadd.f32 %v1618_v8, %v725_v28 }
 0x1ab   :  { %v1751_v2 = vadd.f32 %v1618_v8, %v726_v44  ;;  %v1754_v14 = vadd.f32 %v1618_v8, %v727_v4  ;;  %v1757_v22 = vadd.f32 %v1618_v8, %v728_v18  ;;  %v1760_v36 = vadd.f32 %v1618_v8, %v729_v52 }
 0x1ac   :  { %v1763_v50 = vadd.f32 %v1618_v8, %v730_v60  ;;  %v1766_v0 = vadd.f32 %v1618_v8, %v731_v31  ;;  %v1769_v10 = vadd.f32 %v1618_v8, %v732_v35  ;;  %v1772_v28 = vadd.f32 %v1618_v8, %v733_v43 }
 0x1ad   :  { %v1775_v44 = vadd.f32 %v1618_v8, %v734_v49  ;;  %v1778_v4 = vadd.f32 %v1618_v8, %v735_v57  ;;  %v1781_v18 = vadd.f32 %v1618_v8, %v736_v63  ;;  %v1784_v52 = vadd.f32 %v1618_v8, %v737_v7 }
 0x1ae   :  { %v1787_v60 = vadd.f32 %v1618_v8, %v738_v13  ;;  %v1790_v31 = vadd.f32 %v1618_v8, %v739_v21  ;;  %v1793_v35 = vadd.f32 %v1618_v8, %v740_v27  ;;  %v1796_v43 = vadd.f32 %v1618_v8, %v741_v39 }
 0x1af   :  { %v1799_v49 = vadd.f32 %v1618_v8, %v742_v47  ;;  %v799_v57 = vmax.f32 %v750_v59, 0.0  ;;  %v800_v33 = vmax.f32 %v751_v3, 0.0  ;;  %v801_v63 = vmax.f32 %v752_v51, 0.0 }
 0x1b0   :  { %v802_v40 = vmax.f32 %v1667_v23, 0.0  ;;  %v803_v7 = vmax.f32 %v1670_v56, 0.0  ;;  %v804_v41 = vmax.f32 %v1673_v17, 0.0  ;;  %v805_v13 = vmax.f32 %v1676_v25, 0.0 }
 0x1b1   :  { %v806_v53 = vmax.f32 %v1679_v29, 0.0  ;;  %v807_v21 = vmax.f32 %v1682_v15, 0.0  ;;  %v808_v55 = vmax.f32 %v1685_v37, 0.0  ;;  %v809_v8 = vmax.f32 %v1688_v54, 0.0  ;;  %848 = vst [vmem:[#allocation2] sm:$0xff] %v799_v57  ;;  %849 = vst [vmem:[#allocation2 + $0x8] sm:$0xff] %v800_v33 }
 0x1b2   :  { %850 = vst [vmem:[#allocation2 + $0x10] sm:$0xff] %v801_v63  ;;  %v810_v27 = vmax.f32 %v1691_v9, 0.0  ;;  %v811_v11 = vmax.f32 %v1694_v61, 0.0  ;;  %v812_v39 = vmax.f32 %v1697_v16, 0.0  ;;  %v813_v1 = vmax.f32 %v1700_v45, 0.0  ;;  %851 = vst [vmem:[#allocation2 + $0x18] sm:$0xff] %v802_v40 }
 0x1b3   :  { %852 = vst [vmem:[#allocation2 + $0x20] sm:$0xff] %v803_v7  ;;  %853 = vst [vmem:[#allocation2 + $0x28] sm:$0xff] %v804_v41  ;;  %v814_v47 = vmax.f32 %v1703_v19, 0.0  ;;  %v815_v59 = vmax.f32 %v1706_v5, 0.0  ;;  %v816_v3 = vmax.f32 %v1709_v30, 0.0  ;;  %v817_v51 = vmax.f32 %v1712_v34, 0.0 }
 0x1b4   :  { %854 = vst [vmem:[#allocation2 + $0x30] sm:$0xff] %v805_v13  ;;  %855 = vst [vmem:[#allocation2 + $0x38] sm:$0xff] %v806_v53  ;;  %v818_v23 = vmax.f32 %v1715_v42, 0.0  ;;  %v819_v56 = vmax.f32 %v1718_v48, 0.0  ;;  %v820_v17 = vmax.f32 %v1721_v62, 0.0  ;;  %v821_v25 = vmax.f32 %v1724_v24, 0.0 }
 0x1b5   :  { %856 = vst [vmem:[#allocation2 + $0x40] sm:$0xff] %v807_v21  ;;  %857 = vst [vmem:[#allocation2 + $0x48] sm:$0xff] %v808_v55  ;;  %v822_v29 = vmax.f32 %v1727_v6, 0.0  ;;  %v823_v15 = vmax.f32 %v1730_v12, 0.0  ;;  %v824_v37 = vmax.f32 %v1733_v20, 0.0  ;;  %v825_v54 = vmax.f32 %v1736_v26, 0.0 }
 0x1b6   :  { %858 = vst [vmem:[#allocation2 + $0x50] sm:$0xff] %v809_v8  ;;  %859 = vst [vmem:[#allocation2 + $0x58] sm:$0xff] %v810_v27  ;;  %v826_v9 = vmax.f32 %v1739_v38, 0.0  ;;  %v827_v61 = vmax.f32 %v1742_v46, 0.0  ;;  %v828_v16 = vmax.f32 %v1745_v58, 0.0  ;;  %v829_v45 = vmax.f32 %v1748_v32, 0.0 }
 0x1b7   :  { %860 = vst [vmem:[#allocation2 + $0x60] sm:$0xff] %v811_v11  ;;  %861 = vst [vmem:[#allocation2 + $0x68] sm:$0xff] %v812_v39  ;;  %v830_v19 = vmax.f32 %v1751_v2, 0.0  ;;  %v831_v5 = vmax.f32 %v1754_v14, 0.0  ;;  %v832_v30 = vmax.f32 %v1757_v22, 0.0  ;;  %v833_v34 = vmax.f32 %v1760_v36, 0.0 }
 0x1b8   :  { %862 = vst [vmem:[#allocation2 + $0x70] sm:$0xff] %v813_v1  ;;  %863 = vst [vmem:[#allocation2 + $0x78] sm:$0xff] %v814_v47  ;;  %v834_v42 = vmax.f32 %v1763_v50, 0.0  ;;  %v835_v48 = vmax.f32 %v1766_v0, 0.0  ;;  %v836_v62 = vmax.f32 %v1769_v10, 0.0  ;;  %v837_v24 = vmax.f32 %v1772_v28, 0.0 }
 0x1b9   :  { %864 = vst [vmem:[#allocation2 + $0x80] sm:$0xff] %v815_v59  ;;  %865 = vst [vmem:[#allocation2 + $0x88] sm:$0xff] %v816_v3  ;;  %v838_v6 = vmax.f32 %v1775_v44, 0.0  ;;  %v839_v12 = vmax.f32 %v1778_v4, 0.0  ;;  %v840_v20 = vmax.f32 %v1781_v18, 0.0  ;;  %v841_v26 = vmax.f32 %v1784_v52, 0.0 }
 0x1ba   :  { %866 = vst [vmem:[#allocation2 + $0x90] sm:$0xff] %v817_v51  ;;  %867 = vst [vmem:[#allocation2 + $0x98] sm:$0xff] %v818_v23  ;;  %v842_v38 = vmax.f32 %v1787_v60, 0.0  ;;  %v843_v46 = vmax.f32 %v1790_v31, 0.0  ;;  %v844_v58 = vmax.f32 %v1793_v35, 0.0  ;;  %v845_v32 = vmax.f32 %v1796_v43, 0.0 }
 0x1bb   :  { %868 = vst [vmem:[#allocation2 + $0xa0] sm:$0xff] %v819_v56  ;;  %869 = vst [vmem:[#allocation2 + $0xa8] sm:$0xff] %v820_v17  ;;  %v846_v2 = vmax.f32 %v1799_v49, 0.0 }
 0x1bc   :  { %870 = vst [vmem:[#allocation2 + $0xb0] sm:$0xff] %v821_v25  ;;  %871 = vst [vmem:[#allocation2 + $0xb8] sm:$0xff] %v822_v29 }
 0x1bd   :  { %872 = vst [vmem:[#allocation2 + $0xc0] sm:$0xff] %v823_v15  ;;  %873 = vst [vmem:[#allocation2 + $0xc8] sm:$0xff] %v824_v37 }
 0x1be   :  { %874 = vst [vmem:[#allocation2 + $0xd0] sm:$0xff] %v825_v54  ;;  %875 = vst [vmem:[#allocation2 + $0xd8] sm:$0xff] %v826_v9 }
 0x1bf   :  { %876 = vst [vmem:[#allocation2 + $0xe0] sm:$0xff] %v827_v61  ;;  %877 = vst [vmem:[#allocation2 + $0xe8] sm:$0xff] %v828_v16 }
 0x1c0   :  { %878 = vst [vmem:[#allocation2 + $0xf0] sm:$0xff] %v829_v45  ;;  %879 = vst [vmem:[#allocation2 + $0xf8] sm:$0xff] %v830_v19 }
 0x1c1   :  { %880 = vst [vmem:[#allocation2 + $0x100] sm:$0xff] %v831_v5  ;;  %881 = vst [vmem:[#allocation2 + $0x108] sm:$0xff] %v832_v30 }
 0x1c2   :  { %882 = vst [vmem:[#allocation2 + $0x110] sm:$0xff] %v833_v34  ;;  %883 = vst [vmem:[#allocation2 + $0x118] sm:$0xff] %v834_v42 }
 0x1c3   :  { %884 = vst [vmem:[#allocation2 + $0x120] sm:$0xff] %v835_v48  ;;  %885 = vst [vmem:[#allocation2 + $0x128] sm:$0xff] %v836_v62 }
 0x1c4   :  { %886 = vst [vmem:[#allocation2 + $0x130] sm:$0xff] %v837_v24  ;;  %887 = vst [vmem:[#allocation2 + $0x138] sm:$0xff] %v838_v6 }
 0x1c5   :  { %888 = vst [vmem:[#allocation2 + $0x140] sm:$0xff] %v839_v12  ;;  %889 = vst [vmem:[#allocation2 + $0x148] sm:$0xff] %v840_v20 }
 0x1c6   :  { %890 = vst [vmem:[#allocation2 + $0x150] sm:$0xff] %v841_v26  ;;  %891 = vst [vmem:[#allocation2 + $0x158] sm:$0xff] %v842_v38 }
 0x1c7   :  { %892 = vst [vmem:[#allocation2 + $0x160] sm:$0xff] %v843_v46  ;;  %893 = vst [vmem:[#allocation2 + $0x168] sm:$0xff] %v844_v58 }
 0x1c8   :  { %894 = vst [vmem:[#allocation2 + $0x170] sm:$0xff] %v845_v32  ;;  %895 = vst [vmem:[#allocation2 + $0x178] sm:$0xff] %v846_v2 }
 0x1c9   :  { %1152 = shalt.err (!%p1149_p4)
}
 0x1ca   :  { %s1153_s22 = scalar_lea.hbm %s1862_s4, 6272 }
 0x1cb   :  { %p1154_p5 = scmp.ne.s32.totalorder %s1862_s4, %s1153_s22  ;;  %p1157_p6 = scmp.lt.u32.totalorder %s1153_s22, %s1862_s4 }
 0x1cd   :  { %p1159_p7 = pnand %p1157_p6, %p1154_p5 }
 0x1cf   :  { %1162 = shalt.err (!%p1159_p7)
}
 0x1d0   :  { %s1168_s27 = smov 128   ;;  %s1169_s28 = smov 8  }
 0x1d1   :  { %908 = dma.vmem_to_hbm [thread:$0]  %s903_s3, 6272, %s1862_s4, [#allocation3], %s1168_s27, %s1168_s27, %s1169_s28  }
 0x1d2   :  { %1163 = dma.done.wait [#allocation3], 6272  }
 0x1d3   :  { %1164 = vsyncadd [#allocation3], 4294961024 }
 0x1d4   :  { %912 = vsyncpa [#allocation3], 1 }

</bundles_post_ra>
